<compile_context>
chip_gen: v7x
topology: tpu7x:2x2x1
jax: 0.10.0
libtpu: 0.0.40
codegen_flags: <defaults>
</compile_context>

<pallas_src>
import jax
import jax.numpy as jnp
from jax.experimental import pallas as pl
from jax.experimental.pallas import tpu as pltpu


def _round_up(x, m):
    return ((x + m - 1) // m) * m


# ----------------------------------------------------------------------------
# Pallas kernel: fused classification head  (Linear -> ReLU -> Linear)
# ----------------------------------------------------------------------------
def _cls_head_kernel(x_ref, w1_ref, b1_ref, w2_ref, b2_ref, o_ref):
    # x_ref:  (tm, H)   f32 rows of hidden states (cast to bf16 in-kernel)
    # w1_ref: (H, H)    bf16 first linear weight (in x out), resident
    # b1_ref: (1, H)    f32
    # w2_ref: (H, CP)   bf16 second linear weight, class dim padded to 128
    # b2_ref: (1, CP)   f32
    # o_ref:  (tm, CP)  f32 logits (lane-dense)
    #
    # bf16 MXU operands, f32 accumulation; f32 VPU epilogue (bias + ReLU).
    x = x_ref[...].astype(jnp.bfloat16)
    h = jnp.dot(x, w1_ref[...], preferred_element_type=jnp.float32)
    h = jnp.maximum(h + b1_ref[...], 0.0)                       # ReLU in f32
    logits = jnp.dot(h.astype(jnp.bfloat16), w2_ref[...],
                     preferred_element_type=jnp.float32)
    o_ref[...] = logits + b2_ref[...]


def cls_head(x, w1_bf16, b1_f32, w2_pad, b2_pad, num_classes, *, tm_target=256):
    """x: (M, H) float32 hidden-state rows.

    w1_bf16: (H, H) bf16; b1_f32: (1, H) f32; w2_pad: (H, CP) bf16 with the
    class dim zero-padded to CP = round_up(num_classes, 128); b2_pad: (1, CP)
    f32.  Returns (M, num_classes) float32 logits.
    """
    M, H = x.shape
    CP = w2_pad.shape[1]
    C = num_classes

    # Row tile: multiple of 16 (bf16 sublane tile), ~M/4 so the grid has
    # ~4 steps (>=2 per TC on v7x megacore; 3-4 on single-TC v5e/v6e), capped
    # at tm_target.  Small M degenerates to a single-block call by design.
    tm = min(tm_target, max(16, _round_up(pl.cdiv(M, 4), 16)))
    MP = _round_up(M, tm)
    n_tiles = MP // tm

    # Pad rows only when needed (padded rows produce garbage logits from the
    # bias->ReLU->bias path; they are sliced off below).
    if MP != M:
        x = jnp.pad(x, ((0, MP - M), (0, 0)))

    cost = pl.CostEstimate(
        flops=2 * MP * H * H + 2 * MP * H * CP,
        transcendentals=0,
        bytes_accessed=(MP * H * 4 + H * H * 2 + H * 4
                        + H * CP * 2 + CP * 4 + MP * CP * 4),
    )

    # Explicit VMEM budget: x double-buffered (f32), weights single-buffered
    # (bf16), biases sublane-padded, output double-buffered (f32).  2x margin,
    # clamped to [4 MiB, 64 MiB] so it is valid on v7x's smaller VMEM.
    vmem_bytes = (2 * tm * H * 4          # x tiles (double-buffered)
                  + H * H * 2             # W1 (single-buffered)
                  + 8 * H * 4             # b1 (sublane-padded)
                  + H * CP * 2            # W2 (single-buffered)
                  + 8 * CP * 4            # b2
                  + 2 * tm * CP * 4)      # output tiles (double-buffered)
    vmem_limit = int(min(max(2 * vmem_bytes, 4 << 20), 64 << 20))

    out = pl.pallas_call(
        _cls_head_kernel,
        out_shape=jax.ShapeDtypeStruct((MP, CP), jnp.float32),
        grid_spec=pltpu.PrefetchScalarGridSpec(
            num_scalar_prefetch=0,
            grid=(n_tiles,),
            in_specs=[
                # streamed x rows (double-buffered by default)
                pl.BlockSpec((tm, H), lambda i: (i, 0)),
                # resident operands: constant block index -> single buffer
                pl.BlockSpec((H, H), lambda i: (0, 0),
                             pipeline_mode=pl.Buffered(1)),
                pl.BlockSpec((1, H), lambda i: (0, 0),
                             pipeline_mode=pl.Buffered(1)),
                pl.BlockSpec((H, CP), lambda i: (0, 0),
                             pipeline_mode=pl.Buffered(1)),
                pl.BlockSpec((1, CP), lambda i: (0, 0),
                             pipeline_mode=pl.Buffered(1)),
            ],
            out_specs=pl.BlockSpec((tm, CP), lambda i: (i, 0)),
        ),
        compiler_params=pltpu.CompilerParams(
            dimension_semantics=("parallel",),
            vmem_limit_bytes=vmem_limit),
        cost_estimate=cost,
    )(x, w1_bf16, b1_f32, w2_pad, b2_pad)

    # Slice padded rows / padded classes back off.
    return out[:M, :C]


# ----------------------------------------------------------------------------
# One-time head-parameter preparation (cast / pad weights once, not per call)
# ----------------------------------------------------------------------------
def prepare_head_params(w1, b1, w2, b2, num_classes):
    H = w1.shape[0]
    C = num_classes
    CP = _round_up(C, 128)
    return {
        "w1_bf16": w1.astype(jnp.bfloat16),
        "b1_f32": b1.astype(jnp.float32).reshape(1, H),
        "w2_pad": jnp.zeros((H, CP), jnp.bfloat16).at[:, :C].set(
            w2.astype(jnp.bfloat16)),
        "b2_pad": jnp.zeros((1, CP), jnp.float32).at[:, :C].set(
            b2.astype(jnp.float32).reshape(1, C)),
    }


# ----------------------------------------------------------------------------
# Synthetic deterministic "backbone" (stand-in for the pretrained LiLT model)
# ----------------------------------------------------------------------------
# TODO(synk): the full pretrained LiLT transformer encoder (self-attention
# stack + layout branch, loaded from a local checkpoint) is not reimplemented;
# it is replaced by a deterministic embedding backbone so the head kernel sees
# realistic inputs.
def synthetic_backbone(params, input_ids, bbox, attention_mask):
    h = params["word_emb"][input_ids]                                 # (B,S,H)
    h = h + jnp.sum(params["bbox_emb"][bbox], axis=2)                 # (B,S,H)
    mu = jnp.mean(h, axis=-1, keepdims=True)
    var = jnp.var(h, axis=-1, keepdims=True)
    h = (h - mu) * jax.lax.rsqrt(var + 1e-12)
    h = h * attention_mask[..., None].astype(h.dtype)
    return h                                                           # last_hidden_state


# ----------------------------------------------------------------------------
# SERClassification forward
# ----------------------------------------------------------------------------
def ser_classification_forward(params, batch, num_classes):
    last_hidden_state = synthetic_backbone(
        params, batch["input_ids"], batch["bbox"], batch["attention_mask"])
    output = last_hidden_state[:, :512, :]          # slice to first 512 tokens
    B, S, H = output.shape
    x2d = output.reshape(B * S, H)                  # flatten rows for the kernel
    logits2d = cls_head(x2d, params["w1_bf16"], params["b1_f32"],
                        params["w2_pad"], params["b2_pad"], num_classes)
    logits = logits2d.reshape(B, S, num_classes)
    return {"logits": logits}


# ----------------------------------------------------------------------------
# Deterministic parameter init + example run
# ----------------------------------------------------------------------------
def init_params(key, vocab_size, bbox_buckets, hidden_dim, num_classes):
    ks = jax.random.split(key, 6)
    scale = 1.0 / jnp.sqrt(hidden_dim)
    params = {
        "word_emb": jax.random.normal(ks[0], (vocab_size, hidden_dim), jnp.float32) * 0.02,
        "bbox_emb": jax.random.normal(ks[1], (bbox_buckets, hidden_dim), jnp.float32) * 0.02,
        # nn.Linear stores (out, in); we keep (in, out) so the kernel does x @ W.
        "w1": jax.random.uniform(ks[2], (hidden_dim, hidden_dim), jnp.float32,
                                 -scale, scale),
        "b1": jax.random.uniform(ks[3], (1, hidden_dim), jnp.float32, -scale, scale),
        "w2": jax.random.uniform(ks[4], (hidden_dim, num_classes), jnp.float32,
                                 -scale, scale),
        "b2": jax.random.uniform(ks[5], (1, num_classes), jnp.float32, -scale, scale),
    }
    # Pre-cast / pre-pad the head weights once (static across forward calls).
    params.update(prepare_head_params(params["w1"], params["b1"],
                                      params["w2"], params["b2"], num_classes))
    return params


if __name__ == "__main__":
    B, S, H = 2, 8, 32          # small shapes: batch=2, seq=8 (<512), hidden=32
    NUM_CLASSES = 5
    VOCAB = 100
    BBOX_BUCKETS = 64           # bbox coords quantized into [0, 64)

    key = jax.random.PRNGKey(0)
    k_params, k_ids, k_bbox, k_mask = jax.random.split(key, 4)

    params = init_params(k_params, VOCAB, BBOX_BUCKETS, H, NUM_CLASSES)

    batch = {
        "input_ids": jax.random.randint(k_ids, (B, S), 0, VOCAB, dtype=jnp.int32),
        "bbox": jax.random.randint(k_bbox, (B, S, 4), 0, BBOX_BUCKETS, dtype=jnp.int32),
        "attention_mask": jnp.ones((B, S), dtype=jnp.int32),
    }

    out = ser_classification_forward(params, batch, NUM_CLASSES)
    logits = jax.block_until_ready(out["logits"])
    assert logits.shape == (B, S, NUM_CLASSES), logits.shape

    # Cross-check the Pallas head against a pure-JAX reference that uses the
    # same bf16-operand / f32-accumulation precision recipe.
    hs = synthetic_backbone(params, batch["input_ids"], batch["bbox"],
                            batch["attention_mask"])[:, :512, :]
    Bc, Sc, Hc = hs.shape
    xb = hs.reshape(Bc * Sc, Hc).astype(jnp.bfloat16)
    h_ref = jnp.dot(xb, params["w1"].astype(jnp.bfloat16),
                    preferred_element_type=jnp.float32) + params["b1"]
    h_ref = jnp.maximum(h_ref, 0.0)
    ref = jnp.dot(h_ref.astype(jnp.bfloat16), params["w2"].astype(jnp.bfloat16),
                  preferred_element_type=jnp.float32) + params["b2"]
    ref = ref.reshape(Bc, Sc, -1)
    assert jnp.allclose(logits, ref, atol=1e-3, rtol=1e-3), \
        float(jnp.max(jnp.abs(logits - ref)))

    print("KERNEL_OK")
</pallas_src>

<mosaic_0001>
module attributes {stable_mosaic.version = 11 : i64} {
  func.func @_cls_head_kernel(%arg0: i32, %arg1: memref<16x32xf32, #tpu.memory_space<vmem>>, %arg2: memref<32x32xbf16, #tpu.memory_space<vmem>>, %arg3: memref<1x32xf32, #tpu.memory_space<vmem>>, %arg4: memref<32x128xbf16, #tpu.memory_space<vmem>>, %arg5: memref<1x128xf32, #tpu.memory_space<vmem>>, %arg6: memref<16x128xf32, #tpu.memory_space<vmem>>) attributes {dimension_semantics = [#tpu.dimension_semantics<parallel>], iteration_bounds = array<i64: 1>, scalar_prefetch = 0 : i64, scratch_operands = 0 : i64, tpu.core_type = #tpu.core_type<tc>, window_params = [{transform_indices = @transform_0, window_bounds = array<i64: 16, 32>}, {pipeline_mode = #tpu.pipeline_mode<synchronous>, transform_indices = @transform_1, window_bounds = array<i64: 32, 32>}, {pipeline_mode = #tpu.pipeline_mode<synchronous>, transform_indices = @transform_2, window_bounds = array<i64: 1, 32>}, {pipeline_mode = #tpu.pipeline_mode<synchronous>, transform_indices = @transform_3, window_bounds = array<i64: 32, 128>}, {pipeline_mode = #tpu.pipeline_mode<synchronous>, transform_indices = @transform_4, window_bounds = array<i64: 1, 128>}, {transform_indices = @transform_5, window_bounds = array<i64: 16, 128>}]} {
    %c0 = arith.constant 0 : index
    %c0_0 = arith.constant 0 : index
    %0 = vector.load %arg1[%c0, %c0_0] : memref<16x32xf32, #tpu.memory_space<vmem>>, vector<16x32xf32>
    %1 = arith.truncf %0 : vector<16x32xf32> to vector<16x32xbf16>
    %c0_1 = arith.constant 0 : index
    %c0_2 = arith.constant 0 : index
    %2 = vector.load %arg2[%c0_1, %c0_2] : memref<32x32xbf16, #tpu.memory_space<vmem>>, vector<32x32xbf16>
    %cst = arith.constant dense<0.000000e+00> : vector<16x32xf32>
    %3 = tpu.matmul %1, %2, %cst {dimension_numbers = #tpu.dot_dimension_numbers<[1], [0], [0], [1], [0, 0, 1, 1], [], []>} : vector<16x32xbf16>, vector<32x32xbf16>, vector<16x32xf32> -> vector<16x32xf32>
    %c0_3 = arith.constant 0 : index
    %c0_4 = arith.constant 0 : index
    %4 = vector.load %arg3[%c0_3, %c0_4] : memref<1x32xf32, #tpu.memory_space<vmem>>, vector<1x32xf32>
    %5 = vector.broadcast %4 : vector<1x32xf32> to vector<16x32xf32>
    %6 = arith.addf %3, %5 : vector<16x32xf32>
    %cst_5 = arith.constant 0.000000e+00 : f32
    %7 = vector.broadcast %cst_5 : f32 to vector<16x32xf32>
    %8 = arith.maximumf %6, %7 : vector<16x32xf32>
    %9 = arith.truncf %8 : vector<16x32xf32> to vector<16x32xbf16>
    %c0_6 = arith.constant 0 : index
    %c0_7 = arith.constant 0 : index
    %10 = vector.load %arg4[%c0_6, %c0_7] : memref<32x128xbf16, #tpu.memory_space<vmem>>, vector<32x128xbf16>
    %cst_8 = arith.constant dense<0.000000e+00> : vector<16x128xf32>
    %11 = tpu.matmul %9, %10, %cst_8 {dimension_numbers = #tpu.dot_dimension_numbers<[1], [0], [0], [1], [0, 0, 1, 1], [], []>} : vector<16x32xbf16>, vector<32x128xbf16>, vector<16x128xf32> -> vector<16x128xf32>
    %c0_9 = arith.constant 0 : index
    %c0_10 = arith.constant 0 : index
    %12 = vector.load %arg5[%c0_9, %c0_10] : memref<1x128xf32, #tpu.memory_space<vmem>>, vector<1x128xf32>
    %13 = vector.broadcast %12 : vector<1x128xf32> to vector<16x128xf32>
    %14 = arith.addf %11, %13 : vector<16x128xf32>
    %c0_11 = arith.constant 0 : index
    %c0_12 = arith.constant 0 : index
    %15 = vector.load %arg6[%c0_11, %c0_12] : memref<16x128xf32, #tpu.memory_space<vmem>>, vector<16x128xf32>
    tpu.vector_store %arg6[%c0_11, %c0_12], %14 {strides = array<i32>} : memref<16x128xf32, #tpu.memory_space<vmem>>, vector<16x128xf32>,
    return
  }
  func.func @transform_0(%arg0: i32) -> (i32, i32) {
    %c0_i32 = arith.constant 0 : i32
    %c0_i32_0 = arith.constant 0 : i32
    return %arg0, %c0_i32 : i32, i32
  }
  func.func @transform_1(%arg0: i32) -> (i32, i32) {
    %c0_i32 = arith.constant 0 : i32
    %c0_i32_0 = arith.constant 0 : i32
    %c0_i32_1 = arith.constant 0 : i32
    return %c0_i32, %c0_i32_0 : i32, i32
  }
  func.func @transform_2(%arg0: i32) -> (i32, i32) {
    %c0_i32 = arith.constant 0 : i32
    %c0_i32_0 = arith.constant 0 : i32
    %c0_i32_1 = arith.constant 0 : i32
    return %c0_i32, %c0_i32_0 : i32, i32
  }
  func.func @transform_3(%arg0: i32) -> (i32, i32) {
    %c0_i32 = arith.constant 0 : i32
    %c0_i32_0 = arith.constant 0 : i32
    %c0_i32_1 = arith.constant 0 : i32
    return %c0_i32, %c0_i32_0 : i32, i32
  }
  func.func @transform_4(%arg0: i32) -> (i32, i32) {
    %c0_i32 = arith.constant 0 : i32
    %c0_i32_0 = arith.constant 0 : i32
    %c0_i32_1 = arith.constant 0 : i32
    return %c0_i32, %c0_i32_0 : i32, i32
  }
  func.func @transform_5(%arg0: i32) -> (i32, i32) {
    %c0_i32 = arith.constant 0 : i32
    %c0_i32_0 = arith.constant 0 : i32
    return %arg0, %c0_i32 : i32, i32
  }
}

</mosaic_0001>

<bundles_post_ra>
// kernel: tpu_custom_call.1
= control target key start
LH: loop header
LB: loop body
LE: loop exit
PB: predicated region body
PF: predicated region fallthrough
CT: control target
= control target key end

     0   :  { %10 = vsyncpa [#allocation3], 0  ;;  %s470_s0 = inlined_call_operand.hbm [shape: f32[16,32], index: 0, kind: input, shape index: {}]   ;;  %s471_s1 = inlined_call_operand.hbm [shape: bf16[32,32], index: 1, kind: input, shape index: {}]   ;;  %s472_s2 = inlined_call_operand.vmem [shape: f32[1,32], index: 2, kind: input, shape index: {}]   ;;  %s473_s3 = inlined_call_operand.hbm [shape: bf16[32,128], index: 3, kind: input, shape index: {}]   ;;  %s474_s4 = inlined_call_operand.vmem [shape: f32[1,128], index: 4, kind: input, shape index: {}]   ;;  %s475_s5 = inlined_call_operand.hbm [shape: f32[16,128], index: 5, kind: output, shape index: {}]  }
   0x1   :  { %11 = vsyncpa [#allocation6], 0 }
   0x2   :  { %12 = vsyncpa [#allocation4], 0  ;;  %s362_s18 = smov [#allocation5]   ;;  %s268_s22 = scalar_lea.hbm %s471_s1, 256 }
   0x3   :  { %s30_s19 = sshll.u32 %s362_s18, 4  ;;  %p269_p0 = scmp.ne.s32.totalorder %s471_s1, %s268_s22  ;;  %s31_s19 = int_to_ptr.vmem [resolvable:$true] %s30_s19 }
   0x4   :  { %p272_p1 = scmp.lt.u32.totalorder %s268_s22, %s471_s1 }
   0x6   :  { %p274_p2 = pnand %p272_p1, %p269_p0 }
   0x8   :  { %277 = shalt.err (!%p274_p2)
}
   0x9   :  { %s278_s27 = scalar_lea.vmem %s31_s19, 256  ;;  %p283_p4 = scmp.lt.s32.totalorder %s31_s19, %s31_s19 }
   0xa   :  { %p279_p3 = scmp.ne.s32.totalorder %s31_s19, %s278_s27  ;;  %p284_p5 = scmp.lt.s32.totalorder %s278_s27, %s278_s27 }
   0xc   :  { %p285_p6 = por %p284_p5, %p283_p4 }
   0xe   :  { %p286_p7 = pnand %p285_p6, %p279_p3 }
  0x10   :  { %289 = shalt.err (!%p286_p7)
}
  0x11   :  { %s363_s28 = smov 64   ;;  %s364_s29 = smov 4  }
  0x12   :  { %36 = dma.hbm_to_vmem [thread:$0]  %s471_s1, 256, %s31_s19, [#allocation6], %s363_s28, %s363_s28, %s364_s29  }
  0x13   :  { %s365_s7 = smov [#allocation2]   ;;  %s290_s11 = scalar_lea.hbm %s470_s0, 256 }
  0x14   :  { %s18_s8 = sshll.u32 %s365_s7, 4  ;;  %p291_p8 = scmp.ne.s32.totalorder %s470_s0, %s290_s11  ;;  %s19_s8 = int_to_ptr.vmem [resolvable:$true] %s18_s8 }
  0x15   :  { %p294_p9 = scmp.lt.u32.totalorder %s290_s11, %s470_s0 }
  0x17   :  { %p296_p10 = pnand %p294_p9, %p291_p8 }
  0x19   :  { %299 = shalt.err (!%p296_p10)
}
  0x1a   :  { %s300_s16 = scalar_lea.vmem %s19_s8, 256  ;;  %p305_p12 = scmp.lt.s32.totalorder %s19_s8, %s19_s8 }
  0x1b   :  { %p301_p11 = scmp.ne.s32.totalorder %s19_s8, %s300_s16  ;;  %p306_p13 = scmp.lt.s32.totalorder %s300_s16, %s300_s16 }
  0x1d   :  { %p307_p0 = por %p306_p13, %p305_p12 }
  0x1f   :  { %p308_p1 = pnand %p307_p0, %p301_p11 }
  0x21   :  { %311 = shalt.err (!%p308_p1)
}
  0x22   :  { %s366_s1 = smov 128   ;;  %s367_s17 = smov 8  }
  0x23   :  { %24 = dma.hbm_to_vmem [thread:$0]  %s470_s0, 256, %s19_s8, [#allocation3], %s366_s1, %s366_s1, %s367_s17  }
  0x24   :  { %s368_s20 = smov [#allocation7]   ;;  %s312_s24 = scalar_lea.hbm %s473_s3, 256 }
  0x25   :  { %s44_s21 = sshll.u32 %s368_s20, 4  ;;  %p313_p2 = scmp.ne.s32.totalorder %s473_s3, %s312_s24  ;;  %s45_s21 = int_to_ptr.vmem [resolvable:$true] %s44_s21 }
  0x26   :  { %p316_p3 = scmp.lt.u32.totalorder %s312_s24, %s473_s3 }
  0x28   :  { %p318_p4 = pnand %p316_p3, %p313_p2 }
  0x2a   :  { %321 = shalt.err (!%p318_p4)
}
  0x2b   :  { %s322_s6 = scalar_lea.vmem %s45_s21, 256  ;;  %p327_p6 = scmp.lt.s32.totalorder %s45_s21, %s45_s21 }
  0x2c   :  { %p323_p5 = scmp.ne.s32.totalorder %s45_s21, %s322_s6  ;;  %p328_p7 = scmp.lt.s32.totalorder %s322_s6, %s322_s6 }
  0x2e   :  { %p329_p8 = por %p328_p7, %p327_p6 }
  0x30   :  { %p330_p9 = pnand %p329_p8, %p323_p5 }
  0x32   :  { %333 = shalt.err (!%p330_p9)
}
  0x33   :  { %50 = dma.hbm_to_vmem [thread:$0]  %s473_s3, 256, %s45_s21, [#allocation6], %s363_s28, %s363_s28, %s364_s29  }
  0x34   :  { %356 = dma.done.wait [#allocation3], 256  }
  0x35   :  { %357 = vsyncadd [#allocation3], 4294967040 }
  0x36   :  { %358 = dma.done.wait [#allocation6], 512  }
  0x37   :  { %359 = vsyncadd [#allocation6], 4294966784  ;;  %v369_v0 = vmov 0.0   ;;  %vm370_vm0 = vmmov 0   ;;  %v264_v1 = vld [vmem:[#allocation5] sm:$0xff]   ;;  %v265_v2 = vld [vmem:[#allocation5 + $0x8] sm:$0xff]  }
  0x38   :  { %238 = vmatprep.subr.bf16.mxu0 %v369_v0  ;;  %242 = vmatprep.mubr.msk.bf16.mxu0 %vm370_vm0, %v369_v0  ;;  %v63_v3 = vld [vmem:[#allocation2] sm:$0xff]  ;;  %v64_v4 = vld [vmem:[#allocation2 + $0x8] sm:$0xff]  ;;  %vm89_vm1 = vcmask 261120   ;;  %s371_s9 = smov [#allocation8]  }
  0x39   :  { %246 = vmatprep.subr.bf16.mxu1 %v369_v0  ;;  %250 = vmatprep.mubr.msk.bf16.mxu1 %vm370_vm0, %v369_v0  ;;  %v65_v5 = vpack.c.bf16 %v64_v4, %v63_v3  ;;  %v266_v6 = vld [vmem:[#allocation7] sm:$0xff]   ;;  %v267_v7 = vld [vmem:[#allocation7 + $0x8] sm:$0xff]   ;;  %s211_s10 = sshll.u32 %s371_s9, 4  ;;  %s212_s10 = int_to_ptr.vmem [resolvable:$true] %s211_s10 }
  0x3a   :  { %239 = vmatpush3.bf16.msra.mxu0 %v264_v1  ;;  %247 = vmatpush3.bf16.msra.mxu1 %v266_v6  ;;  %v224_v8 = vld [vmem:[%s472_s2] ss:$0 sm:$0xff]  ;;  %s334_s2 = scalar_lea.vmem %s212_s10, 256  ;;  %p339_p11 = scmp.lt.s32.totalorder %s212_s10, %s212_s10 }
  0x3b   :  { %240 = vmatprep.subr.bf16.mxu0 %v369_v0  ;;  %248 = vmatprep.subr.bf16.mxu1 %v369_v0  ;;  %v228_v18 = vld [vmem:[%s474_s4] ss:$0 sm:$0xff]  ;;  %p335_p10 = scmp.ne.s32.totalorder %s212_s10, %s334_s2  ;;  %p340_p12 = scmp.lt.s32.totalorder %s334_s2, %s334_s2 }
  0x3d   :  { %p341_p13 = por %p340_p12, %p339_p11 }
  0x3e   :  { %241 = vmatpush3.bf16.msra.mxu0 %v265_v2  ;;  %249 = vmatpush3.bf16.msra.mxu1 %v267_v7 }
  0x3f   :  { %p342_p0 = pnand %p341_p13, %p335_p10 }
  0x41   :  { %243 = vmatmul.mubr.msk.bf16.vlgmr.msra.gmra.mrb[0].mxu0 %vm89_vm1, %v65_v5 }
 0x114   :  { %v127_v9 = vpop.f32.mrb[0].mxu0 }
 0x115   :  { %v128_v10 = vadd.f32 %v224_v8, %v127_v9  ;;  %v244_v11 = vpop.f32.mrb[1].mxu0 }
 0x116   :  { %v130_v12 = vpop.f32.mrb[2].mxu0 }
 0x117   :  { %v131_v13 = vadd.f32 %v224_v8, %v130_v12  ;;  %v245_v14 = vpop.f32.mrb[3].mxu0  ;;  %v134_v15 = vmax.f32 %v128_v10, 0.0 }
 0x119   :  { %v135_v16 = vmax.f32 %v131_v13, 0.0 }
 0x11b   :  { %v136_v17 = vpack.c.bf16 %v135_v16, %v134_v15 }
 0x11d   :  { %251 = vmatmul.mubr.msk.bf16.vlgmr.msra.gmra.mrb[0].mxu1 %vm89_vm1, %v136_v17 }
 0x1f0   :  { %v197_v19 = vpop.f32.mrb[0].mxu1 }
 0x1f1   :  { %v198_v20 = vadd.f32 %v228_v18, %v197_v19  ;;  %v252_v21 = vpop.f32.mrb[1].mxu1 }
 0x1f2   :  { %v200_v22 = vpop.f32.mrb[2].mxu1 }
 0x1f3   :  { %204 = vst [vmem:[#allocation8] sm:$0xff] %v198_v20  ;;  %v201_v23 = vadd.f32 %v228_v18, %v200_v22  ;;  %v253_v24 = vpop.f32.mrb[3].mxu1 }
 0x1f5   :  { %205 = vst [vmem:[#allocation8 + $0x8] sm:$0xff] %v201_v23 }
 0x1f6   :  { %345 = shalt.err (!%p342_p0)
}
 0x1f7   :  { %s346_s12 = scalar_lea.hbm %s475_s5, 256 }
 0x1f8   :  { %p347_p1 = scmp.ne.s32.totalorder %s475_s5, %s346_s12  ;;  %p350_p2 = scmp.lt.u32.totalorder %s346_s12, %s475_s5 }
 0x1fa   :  { %p352_p3 = pnand %p350_p2, %p347_p1 }
 0x1fc   :  { %355 = shalt.err (!%p352_p3)
}
 0x1fd   :  { %217 = dma.vmem_to_hbm [thread:$0]  %s212_s10, 256, %s475_s5, [#allocation4], %s366_s1, %s366_s1, %s367_s17  }
 0x1fe   :  { %360 = dma.done.wait [#allocation4], 256  }
 0x1ff   :  { %361 = vsyncadd [#allocation4], 4294967040 }
 0x200   :  { %221 = vsyncpa [#allocation3], 1 }
 0x201   :  { %222 = vsyncpa [#allocation6], 1 }
 0x202   :  { %223 = vsyncpa [#allocation4], 1 }

</bundles_post_ra>
